<compile_context>
chip_gen: v7x
topology: tpu7x:2x2x1
jax: 0.10.0
libtpu: 0.0.40
codegen_flags: <defaults>
</compile_context>

<pallas_src>
import functools
import math

import jax
import jax.numpy as jnp
from jax.experimental import pallas as pl
from jax.experimental.pallas import tpu as pltpu

_INV_SQRT_2PI = 1.0 / math.sqrt(2.0 * math.pi)
_LN3 = math.log(3.0)
_VMEM_LIMIT = 32 * 1024 * 1024  # safe on v5e/v6e (128 MiB) and v7x (64 MiB)


def _round_up(x, m):
    return (x + m - 1) // m * m


# ----------------------------------------------------------------------------
# Kernel 1: fused Q/K/V/sigma projection, tiled over the B*L row axis.
#   y = x @ [Wq | Wk | Wv | Wsig] + [bq | bk | bv | bsig]
# ----------------------------------------------------------------------------
def _proj_kernel(x_ref, w_ref, b_ref, o_ref):
    x = x_ref[...].astype(jnp.bfloat16)             # bf16 operands, f32 accum
    o_ref[...] = (
        jnp.dot(x, w_ref[...], preferred_element_type=jnp.float32) + b_ref[...]
    )


def fused_projection(x2d, w_all_bf16, b_all, tm_max=256):
    M, Din = x2d.shape
    Dout = w_all_bf16.shape[1]
    Mp = _round_up(M, 8)
    tm = min(tm_max, Mp)
    Mp = _round_up(Mp, tm)
    if Mp != M:
        x2d = jnp.pad(x2d, ((0, Mp - M), (0, 0)))
    out = pl.pallas_call(
        _proj_kernel,
        grid=(Mp // tm,),
        out_shape=jax.ShapeDtypeStruct((Mp, Dout), jnp.float32),
        in_specs=[
            pl.BlockSpec((tm, Din), lambda i: (i, 0)),
            pl.BlockSpec((Din, Dout), lambda i: (0, 0)),
            pl.BlockSpec((1, Dout), lambda i: (0, 0)),
        ],
        out_specs=pl.BlockSpec((tm, Dout), lambda i: (i, 0)),
        compiler_params=pltpu.CompilerParams(
            dimension_semantics=("parallel",),
            vmem_limit_bytes=_VMEM_LIMIT,
        ),
    )(x2d, w_all_bf16, b_all.reshape(1, Dout))
    return out if Mp == M else out[:M]


# ----------------------------------------------------------------------------
# Kernel 2: AnomalyAttention core — one grid step per batch, ALL heads inside:
#   scores -> softmax (series), series @ V, gaussian prior from sigma.
#   dist = |i - j| is generated on-chip (no HBM input).
# ----------------------------------------------------------------------------
def _attn_kernel(proj_ref, out_ref, series_ref, prior_ref, *, D, H, E):
    L = proj_ref.shape[1]
    proj = proj_ref[0]                                   # (L, 3D+H) f32

    row = jax.lax.broadcasted_iota(jnp.int32, (L, L), 0)
    col = jax.lax.broadcasted_iota(jnp.int32, (L, L), 1)
    dist = jnp.abs(row - col).astype(jnp.float32)        # (L, L)
    d2_half = 0.5 * dist * dist
    scale = 1.0 / math.sqrt(E)

    outs = []
    for h in range(H):                                   # static unrolled loop
        q = proj[:, h * E:(h + 1) * E].astype(jnp.bfloat16)
        k = proj[:, D + h * E:D + (h + 1) * E].astype(jnp.bfloat16)
        v = proj[:, 2 * D + h * E:2 * D + (h + 1) * E].astype(jnp.bfloat16)
        sig = proj[:, 3 * D + h:3 * D + h + 1]           # (L, 1) f32

        # scores = q @ k.T, contracting last dims (no explicit transpose)
        scores = jax.lax.dot_general(
            q, k, (((1,), (1,)), ((), ())),
            preferred_element_type=jnp.float32) * scale

        # numerically stable softmax in f32 (matches torch.softmax)
        m = jnp.max(scores, axis=-1, keepdims=True)
        e = jnp.exp(scores - m)
        inv_l = pl.reciprocal(jnp.sum(e, axis=-1, keepdims=True), approx=True)
        series = e * inv_l

        out_h = jnp.dot(series.astype(jnp.bfloat16), v,
                        preferred_element_type=jnp.float32)
        outs.append(out_h)

        # sigma transform: s = 3**(sigmoid(5*sigma) + 1e-5) - 1
        s = jax.nn.sigmoid(sig * 5.0) + 1e-5
        s = jnp.exp(s * _LN3) - 1.0                      # (L, 1)
        r = pl.reciprocal(s, approx=True)                # EUP reciprocal
        prior = (_INV_SQRT_2PI * r) * jnp.exp(-d2_half * (r * r))

        series_ref[0, h] = series
        prior_ref[0, h] = prior

    out_ref[0] = jnp.concatenate(outs, axis=-1)          # lane-dense (L, D)


def anomaly_attention(proj, D, H, E):
    B, L, P = proj.shape
    kern = functools.partial(_attn_kernel, D=D, H=H, E=E)
    return pl.pallas_call(
        kern,
        grid=(B,),
        out_shape=(
            jax.ShapeDtypeStruct((B, L, D), jnp.float32),
            jax.ShapeDtypeStruct((B, H, L, L), jnp.float32),
            jax.ShapeDtypeStruct((B, H, L, L), jnp.float32),
        ),
        in_specs=[pl.BlockSpec((1, L, P), lambda b: (b, 0, 0))],
        out_specs=(
            pl.BlockSpec((1, L, D), lambda b: (b, 0, 0)),
            pl.BlockSpec((1, H, L, L), lambda b: (b, 0, 0, 0)),
            pl.BlockSpec((1, H, L, L), lambda b: (b, 0, 0, 0)),
        ),
        compiler_params=pltpu.CompilerParams(
            dimension_semantics=("parallel",),
            vmem_limit_bytes=_VMEM_LIMIT,
        ),
    )(proj)


# ----------------------------------------------------------------------------
# Kernel 3 (fused): out-projection + residual + LayerNorm1
#                   + (conv1 -> relu -> conv2) + residual + LayerNorm2
# ----------------------------------------------------------------------------
def _ffn_norm_kernel(x_ref, ao_ref, wo_ref, bo_ref, g1_ref, be1_ref,
                     w1_ref, b1_ref, w2_ref, b2_ref, g2_ref, be2_ref, o_ref):
    def layernorm(z, g, beta):
        mu = jnp.mean(z, axis=-1, keepdims=True)
        var = jnp.mean((z - mu) ** 2, axis=-1, keepdims=True)
        return (z - mu) * jax.lax.rsqrt(var + 1e-5) * g + beta

    x = x_ref[0]                                          # (L, D) f32
    ao = ao_ref[0].astype(jnp.bfloat16)                   # attention output

    # fused output projection (wo/bo): new_x = attn_out @ wo + bo
    new_x = (jnp.dot(ao, wo_ref[...], preferred_element_type=jnp.float32)
             + bo_ref[...])

    x1 = x + new_x                        # x = x + dropout(new_x); dropout = id
    xn = layernorm(x1, g1_ref[...], be1_ref[...])         # y = x = norm1(x)

    h = (jnp.dot(xn.astype(jnp.bfloat16), w1_ref[...],
                 preferred_element_type=jnp.float32) + b1_ref[...])
    h = jnp.maximum(h, 0.0)                               # relu
    y = (jnp.dot(h.astype(jnp.bfloat16), w2_ref[...],
                 preferred_element_type=jnp.float32) + b2_ref[...])

    o_ref[0] = layernorm(xn + y, g2_ref[...], be2_ref[...])   # norm2(x + y)


def ffn_norm(x, attn_out, p):
    B, L, D = x.shape
    F = p["w1"].shape[1]
    full2 = lambda b: (0, 0)
    return pl.pallas_call(
        _ffn_norm_kernel,
        grid=(B,),
        out_shape=jax.ShapeDtypeStruct((B, L, D), jnp.float32),
        in_specs=[
            pl.BlockSpec((1, L, D), lambda b: (b, 0, 0)),
            pl.BlockSpec((1, L, D), lambda b: (b, 0, 0)),
            pl.BlockSpec((D, D), full2),
            pl.BlockSpec((1, D), full2),
            pl.BlockSpec((1, D), full2),
            pl.BlockSpec((1, D), full2),
            pl.BlockSpec((D, F), full2),
            pl.BlockSpec((1, F), full2),
            pl.BlockSpec((F, D), full2),
            pl.BlockSpec((1, D), full2),
            pl.BlockSpec((1, D), full2),
            pl.BlockSpec((1, D), full2),
        ],
        out_specs=pl.BlockSpec((1, L, D), lambda b: (b, 0, 0)),
        compiler_params=pltpu.CompilerParams(
            dimension_semantics=("parallel",),
            vmem_limit_bytes=_VMEM_LIMIT,
        ),
    )(
        x, attn_out,
        p["wo"].astype(jnp.bfloat16), p["bo"].reshape(1, D),
        p["ln1_g"].reshape(1, D), p["ln1_b"].reshape(1, D),
        p["w1"].astype(jnp.bfloat16), p["b1"].reshape(1, F),
        p["w2"].astype(jnp.bfloat16), p["b2"].reshape(1, D),
        p["ln2_g"].reshape(1, D), p["ln2_b"].reshape(1, D),
    )


# ----------------------------------------------------------------------------
# Full EncoderLayer forward
# ----------------------------------------------------------------------------
def encoder_layer(x, p, n_heads):
    B, L, D = x.shape
    H = n_heads
    E = D // H
    P = 3 * D + H

    # Fused Q|K|V|sigma projection: a single pass over x, bf16 weights.
    w_all = jnp.concatenate(
        [p["wq"], p["wk"], p["wv"], p["wsig"]], axis=1).astype(jnp.bfloat16)
    b_all = jnp.concatenate([p["bq"], p["bk"], p["bv"], p["bsig"]], axis=0)
    proj = fused_projection(x.reshape(B * L, D), w_all, b_all).reshape(B, L, P)

    # Per-batch attention (all heads), lane-dense (B, L, D) output.
    attn_out, series, prior = anomaly_attention(proj, D=D, H=H, E=E)

    # Out-projection fused with residual/LayerNorm/FFN kernel.
    final = ffn_norm(x, attn_out, p)

    # sigma returned by AnomalyAttention is the transformed sigma broadcast to
    # (B, H, L, L); broadcast outside the kernel instead of writing it there.
    sig = proj[..., 3 * D:]                               # (B, L, H)
    s = jax.nn.sigmoid(sig * 5.0) + 1e-5
    s = jnp.power(3.0, s) - 1.0
    sigma = jnp.broadcast_to(
        jnp.transpose(s, (0, 2, 1))[..., None], (B, H, L, L))
    return final, series, prior, sigma


# ----------------------------------------------------------------------------
# Pure-JAX reference (f32, same math) for a sanity check
# ----------------------------------------------------------------------------
def reference(x, p, n_heads):
    B, L, D = x.shape
    H = n_heads
    E = D // H
    x2 = x.reshape(B * L, D)
    q = (x2 @ p["wq"] + p["bq"]).reshape(B, L, H, E).transpose(0, 2, 1, 3)
    k = (x2 @ p["wk"] + p["bk"]).reshape(B, L, H, E).transpose(0, 2, 1, 3)
    v = (x2 @ p["wv"] + p["bv"]).reshape(B, L, H, E).transpose(0, 2, 1, 3)
    sig = (x2 @ p["wsig"] + p["bsig"]).reshape(B, L, H).transpose(0, 2, 1)

    scale = 1.0 / math.sqrt(E)
    scores = jnp.einsum("bhle,bhse->bhls", q, k) * scale
    series = jax.nn.softmax(scores, axis=-1)
    out_h = jnp.einsum("bhls,bhse->bhle", series, v)

    s = jax.nn.sigmoid(sig * 5.0) + 1e-5
    s = jnp.power(3.0, s) - 1.0
    s_b = jnp.broadcast_to(s[..., None], (B, H, L, L))
    dist = jnp.abs(
        jnp.arange(L, dtype=jnp.float32)[:, None]
        - jnp.arange(L, dtype=jnp.float32)[None, :]
    )
    prior = (1.0 / (math.sqrt(2.0 * math.pi) * s_b)) * jnp.exp(
        -(dist**2) / (2.0 * s_b**2)
    )

    out = out_h.transpose(0, 2, 1, 3).reshape(B * L, D)
    new_x = (out @ p["wo"] + p["bo"]).reshape(B, L, D)

    def ln(z, g, b):
        mu = jnp.mean(z, axis=-1, keepdims=True)
        var = jnp.mean((z - mu) ** 2, axis=-1, keepdims=True)
        return (z - mu) / jnp.sqrt(var + 1e-5) * g + b

    x1 = x + new_x
    xn = ln(x1, p["ln1_g"], p["ln1_b"])
    h = jnp.maximum(xn @ p["w1"] + p["b1"], 0.0)
    y = h @ p["w2"] + p["b2"]
    final = ln(xn + y, p["ln2_g"], p["ln2_b"])
    return final, series, prior, s_b


if __name__ == "__main__":
    B, L, D, H, F = 2, 8, 32, 4, 128  # batch, seq (win_size), d_model, heads, d_ff

    key = jax.random.PRNGKey(0)
    ks = jax.random.split(key, 16)

    def nrm(k, shape, s=0.05):
        return jax.random.normal(k, shape, dtype=jnp.float32) * s

    params = dict(
        wq=nrm(ks[0], (D, D)), bq=nrm(ks[1], (D,)),
        wk=nrm(ks[2], (D, D)), bk=nrm(ks[3], (D,)),
        wv=nrm(ks[4], (D, D)), bv=nrm(ks[5], (D,)),
        wsig=nrm(ks[6], (D, H)), bsig=nrm(ks[7], (H,)),
        wo=nrm(ks[8], (D, D)), bo=nrm(ks[9], (D,)),
        w1=nrm(ks[10], (D, F)), b1=nrm(ks[11], (F,)),      # conv1 (1x1) as matmul
        w2=nrm(ks[12], (F, D)), b2=nrm(ks[13], (D,)),      # conv2 (1x1) as matmul
        ln1_g=jnp.ones((D,), jnp.float32), ln1_b=jnp.zeros((D,), jnp.float32),
        ln2_g=jnp.ones((D,), jnp.float32), ln2_b=jnp.zeros((D,), jnp.float32),
    )

    x = jax.random.normal(ks[14], (B, L, D), dtype=jnp.float32)

    out, attn, mask, sigma = encoder_layer(x, params, n_heads=H)
    jax.block_until_ready((out, attn, mask, sigma))

    # sanity check against pure-JAX f32 reference (bf16 MXU operands in kernel)
    r_out, r_attn, r_mask, r_sigma = reference(x, params, n_heads=H)
    for a, b in ((out, r_out), (attn, r_attn), (mask, r_mask), (sigma, r_sigma)):
        assert jnp.allclose(a, b, rtol=5e-2, atol=5e-2), "mismatch vs reference"

    print("KERNEL_OK")
</pallas_src>

<mosaic_0001>
module attributes {stable_mosaic.version = 11 : i64} {
  func.func @_proj_kernel(%arg0: i32, %arg1: memref<16x32xf32, #tpu.memory_space<vmem>>, %arg2: memref<32x100xbf16, #tpu.memory_space<vmem>>, %arg3: memref<1x100xf32, #tpu.memory_space<vmem>>, %arg4: memref<16x100xf32, #tpu.memory_space<vmem>>) attributes {dimension_semantics = [#tpu.dimension_semantics<parallel>], iteration_bounds = array<i64: 1>, scalar_prefetch = 0 : i64, scratch_operands = 0 : i64, tpu.core_type = #tpu.core_type<tc>, window_params = [{transform_indices = @transform_0, window_bounds = array<i64: 16, 32>}, {pipeline_mode = #tpu.pipeline_mode<synchronous>, transform_indices = @transform_1, window_bounds = array<i64: 32, 100>}, {pipeline_mode = #tpu.pipeline_mode<synchronous>, transform_indices = @transform_2, window_bounds = array<i64: 1, 100>}, {transform_indices = @transform_3, window_bounds = array<i64: 16, 100>}]} {
    %c0 = arith.constant 0 : index
    %c0_0 = arith.constant 0 : index
    %0 = vector.load %arg1[%c0, %c0_0] : memref<16x32xf32, #tpu.memory_space<vmem>>, vector<16x32xf32>
    %1 = arith.truncf %0 : vector<16x32xf32> to vector<16x32xbf16>
    %c0_1 = arith.constant 0 : index
    %c0_2 = arith.constant 0 : index
    %2 = vector.load %arg2[%c0_1, %c0_2] : memref<32x100xbf16, #tpu.memory_space<vmem>>, vector<32x100xbf16>
    %cst = arith.constant dense<0.000000e+00> : vector<16x100xf32>
    %3 = tpu.matmul %1, %2, %cst {dimension_numbers = #tpu.dot_dimension_numbers<[1], [0], [0], [1], [0, 0, 1, 1], [], []>} : vector<16x32xbf16>, vector<32x100xbf16>, vector<16x100xf32> -> vector<16x100xf32>
    %c0_3 = arith.constant 0 : index
    %c0_4 = arith.constant 0 : index
    %4 = vector.load %arg3[%c0_3, %c0_4] : memref<1x100xf32, #tpu.memory_space<vmem>>, vector<1x100xf32>
    %5 = vector.broadcast %4 : vector<1x100xf32> to vector<16x100xf32>
    %6 = arith.addf %3, %5 : vector<16x100xf32>
    %c0_5 = arith.constant 0 : index
    %c0_6 = arith.constant 0 : index
    %7 = vector.load %arg4[%c0_5, %c0_6] : memref<16x100xf32, #tpu.memory_space<vmem>>, vector<16x100xf32>
    tpu.vector_store %arg4[%c0_5, %c0_6], %6 {strides = array<i32>} : memref<16x100xf32, #tpu.memory_space<vmem>>, vector<16x100xf32>,
    return
  }
  func.func @transform_0(%arg0: i32) -> (i32, i32) {
    %c0_i32 = arith.constant 0 : i32
    %c0_i32_0 = arith.constant 0 : i32
    return %arg0, %c0_i32 : i32, i32
  }
  func.func @transform_1(%arg0: i32) -> (i32, i32) {
    %c0_i32 = arith.constant 0 : i32
    %c0_i32_0 = arith.constant 0 : i32
    %c0_i32_1 = arith.constant 0 : i32
    return %c0_i32, %c0_i32_0 : i32, i32
  }
  func.func @transform_2(%arg0: i32) -> (i32, i32) {
    %c0_i32 = arith.constant 0 : i32
    %c0_i32_0 = arith.constant 0 : i32
    %c0_i32_1 = arith.constant 0 : i32
    return %c0_i32, %c0_i32_0 : i32, i32
  }
  func.func @transform_3(%arg0: i32) -> (i32, i32) {
    %c0_i32 = arith.constant 0 : i32
    %c0_i32_0 = arith.constant 0 : i32
    return %arg0, %c0_i32 : i32, i32
  }
}

</mosaic_0001>

<bundles_post_ra>
// kernel: tpu_custom_call.1
= control target key start
LH: loop header
LB: loop body
LE: loop exit
PB: predicated region body
PF: predicated region fallthrough
CT: control target
= control target key end

     0   :  { %8 = vsyncpa [#allocation3], 0  ;;  %s308_s0 = inlined_call_operand.hbm [shape: f32[16,32], index: 0, kind: input, shape index: {}]   ;;  %s309_s1 = inlined_call_operand.hbm [shape: bf16[32,100], index: 1, kind: input, shape index: {}]   ;;  %s310_s2 = inlined_call_operand.vmem [shape: f32[1,100], index: 2, kind: input, shape index: {}]   ;;  %s311_s3 = inlined_call_operand.hbm [shape: f32[16,100], index: 3, kind: output, shape index: {}]  }
   0x1   :  { %9 = vsyncpa [#allocation6], 0 }
   0x2   :  { %10 = vsyncpa [#allocation4], 0  ;;  %s234_s12 = smov [#allocation2]   ;;  %s162_s16 = scalar_lea.hbm %s308_s0, 256 }
   0x3   :  { %s16_s13 = sshll.u32 %s234_s12, 4  ;;  %p163_p0 = scmp.ne.s32.totalorder %s308_s0, %s162_s16  ;;  %s17_s13 = int_to_ptr.vmem [resolvable:$true] %s16_s13 }
   0x4   :  { %p166_p1 = scmp.lt.u32.totalorder %s162_s16, %s308_s0 }
   0x6   :  { %p168_p2 = pnand %p166_p1, %p163_p0 }
   0x8   :  { %171 = shalt.err (!%p168_p2)
}
   0x9   :  { %s172_s21 = scalar_lea.vmem %s17_s13, 256  ;;  %p177_p4 = scmp.lt.s32.totalorder %s17_s13, %s17_s13 }
   0xa   :  { %p173_p3 = scmp.ne.s32.totalorder %s17_s13, %s172_s21  ;;  %p178_p5 = scmp.lt.s32.totalorder %s172_s21, %s172_s21 }
   0xc   :  { %p179_p6 = por %p178_p5, %p177_p4 }
   0xe   :  { %p180_p7 = pnand %p179_p6, %p173_p3 }
  0x10   :  { %183 = shalt.err (!%p180_p7)
}
  0x11   :  { %s235_s22 = smov 128   ;;  %s236_s23 = smov 8  }
  0x12   :  { %22 = dma.hbm_to_vmem [thread:$0]  %s308_s0, 256, %s17_s13, [#allocation3], %s235_s22, %s235_s22, %s236_s23  }
  0x13   :  { %s237_s26 = smov [#allocation5]   ;;  %s184_s30 = scalar_lea.hbm %s309_s1, 256 }
  0x14   :  { %s28_s27 = sshll.u32 %s237_s26, 4  ;;  %p185_p8 = scmp.ne.s32.totalorder %s309_s1, %s184_s30  ;;  %s29_s27 = int_to_ptr.vmem [resolvable:$true] %s28_s27 }
  0x15   :  { %p188_p9 = scmp.lt.u32.totalorder %s184_s30, %s309_s1 }
  0x17   :  { %p190_p10 = pnand %p188_p9, %p185_p8 }
  0x19   :  { %193 = shalt.err (!%p190_p10)
}
  0x1a   :  { %s194_s8 = scalar_lea.vmem %s29_s27, 256  ;;  %p199_p12 = scmp.lt.s32.totalorder %s29_s27, %s29_s27 }
  0x1b   :  { %p195_p11 = scmp.ne.s32.totalorder %s29_s27, %s194_s8  ;;  %p200_p13 = scmp.lt.s32.totalorder %s194_s8, %s194_s8 }
  0x1d   :  { %p201_p0 = por %p200_p13, %p199_p12 }
  0x1f   :  { %p202_p1 = pnand %p201_p0, %p195_p11 }
  0x21   :  { %205 = shalt.err (!%p202_p1)
}
  0x22   :  { %s238_s0 = smov 64   ;;  %s239_s9 = smov 4  }
  0x23   :  { %34 = dma.hbm_to_vmem [thread:$0]  %s309_s1, 256, %s29_s27, [#allocation6], %s238_s0, %s238_s0, %s239_s9  }
  0x24   :  { %228 = dma.done.wait [#allocation3], 256  }
  0x25   :  { %229 = vsyncadd [#allocation3], 4294967040 }
  0x26   :  { %230 = dma.done.wait [#allocation6], 256  }
  0x27   :  { %231 = vsyncadd [#allocation6], 4294967040  ;;  %v240_v0 = vmov 0.0   ;;  %vm241_vm0 = vmmov 0   ;;  %v160_v1 = vld [vmem:[#allocation5] sm:$0xff]   ;;  %v161_v2 = vld [vmem:[#allocation5 + $0x8] sm:$0xff]  }
  0x28   :  { %143 = vmatprep.subr.bf16.mxu0 %v240_v0  ;;  %147 = vmatprep.mubr.msk.bf16.mxu0 %vm241_vm0, %v240_v0  ;;  %v44_v3 = vld [vmem:[#allocation2] sm:$0xff]  ;;  %v45_v4 = vld [vmem:[#allocation2 + $0x8] sm:$0xff]  ;;  %vm70_vm1 = vcmask 261120   ;;  %vm115_vm2 = vcmask 818176   ;;  %s242_s13 = smov [#allocation7]  }
  0x29   :  { %144 = vmatpush3.bf16.msra.mxu0 %v160_v1  ;;  %v46_v5 = vpack.c.bf16 %v45_v4, %v44_v3  ;;  %v136_v6 = vld [vmem:[%s310_s2] ss:$0 sm:$0xff]  ;;  %s123_s14 = sshll.u32 %s242_s13, 4  ;;  %s124_s14 = int_to_ptr.vmem [resolvable:$true] %s123_s14 }
  0x2a   :  { %145 = vmatprep.subr.bf16.mxu0 %v240_v0  ;;  %s206_s15 = scalar_lea.vmem %s124_s14, 256  ;;  %p211_p3 = scmp.lt.s32.totalorder %s124_s14, %s124_s14 }
  0x2b   :  { %p207_p2 = scmp.ne.s32.totalorder %s124_s14, %s206_s15  ;;  %p212_p4 = scmp.lt.s32.totalorder %s206_s15, %s206_s15 }
  0x2d   :  { %146 = vmatpush3.bf16.msra.mxu0 %v161_v2  ;;  %p213_p5 = por %p212_p4, %p211_p3 }
  0x2f   :  { %p214_p6 = pnand %p213_p5, %p207_p2 }
  0x30   :  { %148 = vmatmul.mubr.msk.bf16.vlgmr.msra.gmra.mrb[0].mxu0 %vm70_vm1, %v46_v5 }
 0x103   :  { %v108_v7 = vpop.f32.mrb[0].mxu0 }
 0x104   :  { %v109_v8 = vadd.f32 %v136_v6, %v108_v7  ;;  %v149_v9 = vpop.f32.mrb[1].mxu0 }
 0x105   :  { %v111_v10 = vpop.f32.mrb[2].mxu0 }
 0x106   :  { %v112_v11 = vadd.f32 %v136_v6, %v111_v10  ;;  %v150_v12 = vpop.f32.mrb[3].mxu0  ;;  %116 = vst.msk [vmem:[#allocation7] sm:$0xff] %vm115_vm2, %v109_v8 }
 0x108   :  { %117 = vst.msk [vmem:[#allocation7 + $0x8] sm:$0xff] %vm115_vm2, %v112_v11 }
 0x109   :  { %217 = shalt.err (!%p214_p6)
}
 0x10a   :  { %s218_s17 = scalar_lea.hbm %s311_s3, 256 }
 0x10b   :  { %p219_p7 = scmp.ne.s32.totalorder %s311_s3, %s218_s17  ;;  %p222_p8 = scmp.lt.u32.totalorder %s218_s17, %s311_s3 }
 0x10d   :  { %p224_p9 = pnand %p222_p8, %p219_p7 }
 0x10f   :  { %227 = shalt.err (!%p224_p9)
}
 0x110   :  { %129 = dma.vmem_to_hbm [thread:$0]  %s124_s14, 256, %s311_s3, [#allocation4], %s235_s22, %s235_s22, %s236_s23  }
 0x111   :  { %232 = dma.done.wait [#allocation4], 256  }
 0x112   :  { %233 = vsyncadd [#allocation4], 4294967040 }
 0x113   :  { %133 = vsyncpa [#allocation3], 1 }
 0x114   :  { %134 = vsyncpa [#allocation6], 1 }
 0x115   :  { %135 = vsyncpa [#allocation4], 1 }

</bundles_post_ra>
